<compile_context>
chip_gen: v7x
topology: tpu7x:2x2x1
jax: 0.10.0
libtpu: 0.0.40
codegen_flags: <defaults>
</compile_context>

<pallas_src>
import jax
import jax.numpy as jnp
from jax.experimental import pallas as pl
from jax.experimental.pallas import tpu as pltpu


def _cast_kernel(x_ref, o_ref):
    # Elementwise dtype conversion on the VPU.
    o_ref[...] = x_ref[...].astype(o_ref.dtype)


# Below these element counts the kernel is launch/step-overhead bound: use a
# single ungridded block instead of a pipelined grid.
_SMALL_THRESHOLD_1TC = 1 << 18       # 256K elements (v5e/v6e: single TC)
_SMALL_THRESHOLD_MULTI_TC = 1 << 20  # 1M elements (v7x: keep >=2 steps earlier)

# Candidate lane-dense last dims (multiples of 128), largest first.
_LANE_CANDIDATES = (8192, 4096, 2048, 1024, 512, 256, 128)

_TPU_PARAMS_CACHE = None


def _tpu_params():
    """Return (vmem_capacity_bytes, num_tensorcores) with safe fallbacks."""
    global _TPU_PARAMS_CACHE
    if _TPU_PARAMS_CACHE is not None:
        return _TPU_PARAMS_CACHE

    vmem = None
    try:
        info = pltpu.get_tpu_info()
        vmem = int(getattr(info, "vmem_capacity_bytes", 0)) or None
    except Exception:
        vmem = None

    kind = ""
    try:
        kind = str(jax.devices()[0].device_kind).lower()
    except Exception:
        pass

    # v7x: 64 MiB VMEM per TC, 2 TensorCores per chip. v5e/v6e: 128 MiB, 1 TC.
    is_v7 = ("v7" in kind) or ("7x" in kind) or (
        vmem is not None and vmem <= (64 << 20))
    if vmem is None:
        vmem = (64 << 20) if is_v7 else (128 << 20)
    num_tc = 2 if is_v7 else 1

    _TPU_PARAMS_CACHE = (vmem, num_tc)
    return _TPU_PARAMS_CACHE


def _budgets():
    """(block byte budget for double-buffered in+out, scoped-VMEM limit)."""
    vmem, _ = _tpu_params()
    budget = max(24 << 20, min(vmem // 3, 64 << 20))
    vmem_limit = min((vmem * 3) // 4, budget * 2 + (16 << 20))
    return budget, vmem_limit


def _cast_whole_array(x: jax.Array, dtype, vmem_limit: int) -> jax.Array:
    """Single ungridded block: block == full array, always a legal BlockSpec."""
    bytes_accessed = x.size * (x.dtype.itemsize + jnp.dtype(dtype).itemsize)
    return pl.pallas_call(
        _cast_kernel,
        out_shape=jax.ShapeDtypeStruct(x.shape, dtype),
        compiler_params=pltpu.CompilerParams(vmem_limit_bytes=vmem_limit),
        cost_estimate=pl.CostEstimate(
            flops=0, transcendentals=0, bytes_accessed=bytes_accessed),
    )(x)


def _cast_tiled(x2d: jax.Array, dtype, block_rows: int, lanes: int,
                vmem_limit: int) -> jax.Array:
    rows = x2d.shape[0]
    total = x2d.size
    bytes_accessed = total * (x2d.dtype.itemsize + jnp.dtype(dtype).itemsize)
    grid = (pl.cdiv(rows, block_rows),)  # ragged tail handled by partial block
    return pl.pallas_call(
        _cast_kernel,
        out_shape=jax.ShapeDtypeStruct((rows, lanes), dtype),
        grid_spec=pltpu.PrefetchScalarGridSpec(
            num_scalar_prefetch=0,
            grid=grid,
            in_specs=[pl.BlockSpec((block_rows, lanes), lambda i: (i, 0))],
            out_specs=pl.BlockSpec((block_rows, lanes), lambda i: (i, 0)),
        ),
        compiler_params=pltpu.CompilerParams(
            dimension_semantics=("parallel",),
            vmem_limit_bytes=vmem_limit,
        ),
        cost_estimate=pl.CostEstimate(
            flops=0, transcendentals=0, bytes_accessed=bytes_accessed),
    )(x2d)


def to_dtype(x: jax.Array, dtype=jnp.float32) -> jax.Array:
    """Pallas equivalent of ToDType.forward: cast x to `dtype`.

    `dtype` defaults to float32 (torch.get_default_dtype()).
    """
    dtype = jnp.dtype(dtype)

    # Identity cast: no kernel launch, no HBM round trip.
    if x.dtype == dtype:
        return x

    orig_shape = x.shape
    total = x.size
    if total == 0:
        return x.astype(dtype)

    budget, vmem_limit = _budgets()
    _, num_tc = _tpu_params()

    # Pick the widest lane-dense last dim that divides the element count.
    lanes = None
    for cand in _LANE_CANDIDATES:
        if total % cand == 0:
            lanes = cand
            break

    if lanes is None:
        # Element count not a multiple of 128 (rare).
        flat2d = x.reshape(1, total)
        in_b = total * x.dtype.itemsize
        out_b = total * dtype.itemsize
        if in_b + out_b <= budget:
            # Whole tensor fits VMEM: single (1, total) block, full-array dims
            # are exempt from the (8,128) rule.  Zero extra HBM copies.
            return _cast_whole_array(flat2d, dtype, vmem_limit).reshape(orig_shape)
        # Large and unaligned: cast the 128-aligned bulk through the tiled
        # kernel, the <128-element tail with a plain astype, and stitch.
        flat = x.reshape(-1)
        bulk = (total // 128) * 128
        head = to_dtype(flat[:bulk], dtype)
        tail = flat[bulk:].astype(dtype)
        return jnp.concatenate([head, tail]).reshape(orig_shape)

    rows = total // lanes
    x2d = x.reshape(rows, lanes)

    # Byte-budgeted block rows: double-buffered input + output per element.
    # No artificial row cap — the VMEM budget alone sizes the block.
    per_elem = 2 * (x.dtype.itemsize + dtype.itemsize)
    max_rows = max(8, budget // (per_elem * lanes))
    block_rows = max(8, (max_rows // 8) * 8)

    if num_tc >= 2:
        use_whole = total < _SMALL_THRESHOLD_MULTI_TC
    else:
        use_whole = total < _SMALL_THRESHOLD_1TC or rows <= block_rows

    if use_whole:
        # Launch/per-step overhead dominates, or everything fits one block.
        return _cast_whole_array(x2d, dtype, vmem_limit).reshape(orig_shape)

    if num_tc >= 2:
        # Ensure at least num_tc grid steps so every TensorCore gets work.
        per_core_rows = ((rows + num_tc - 1) // num_tc + 7) // 8 * 8
        block_rows = min(block_rows, max(8, per_core_rows))

        # Nudge short/odd grids to an even step count (<= 25% block shrink)
        # so the two TensorCores stay balanced.
        steps = -(-rows // block_rows)
        if steps > 1 and steps % num_tc != 0:
            shrink_floor = max(8, (block_rows * 3) // 4)
            br = block_rows
            while br - 8 >= shrink_floor:
                br -= 8
                if (-(-rows // br)) % num_tc == 0:
                    block_rows = br
                    break
    # TODO(synk): optionally sweep pipeline_mode=pl.Buffered(3) on the input
    # BlockSpec on v7x once xprof shows DMA issue latency peeking out.

    y2d = _cast_tiled(x2d, dtype, block_rows, lanes, vmem_limit)
    return y2d.reshape(orig_shape)


if __name__ == "__main__":
    key = jax.random.PRNGKey(0)

    # --- Small input matching the module-sized example (NCHW) ---------------
    x = jax.random.normal(key, (2, 4, 16, 16), dtype=jnp.bfloat16)

    y = to_dtype(x)                      # default: cast to float32
    jax.block_until_ready(y)
    assert y.dtype == jnp.float32
    assert y.shape == x.shape
    assert jnp.array_equal(y, x.astype(jnp.float32))

    # Identity cast -> early-out (no kernel launch).
    z = to_dtype(y, jnp.float32)
    assert z is y

    # f32 -> bf16 (round-to-nearest-even), matches plain JAX/XLA cast.
    w = to_dtype(y, jnp.bfloat16)
    jax.block_until_ready(w)
    assert w.dtype == jnp.bfloat16
    assert jnp.array_equal(w, y.astype(jnp.bfloat16))

    # --- Larger input to exercise the lane-dense, byte-budgeted tiled path --
    xl = jax.random.normal(jax.random.PRNGKey(1), (16, 16, 128, 256),
                           dtype=jnp.bfloat16)
    yl = to_dtype(xl)
    jax.block_until_ready(yl)
    assert yl.dtype == jnp.float32
    assert yl.shape == xl.shape
    assert jnp.array_equal(yl, xl.astype(jnp.float32))

    # --- Element count not a multiple of 128 (whole-array (1, N) block) -----
    xo = jax.random.normal(jax.random.PRNGKey(2), (5, 7, 9), dtype=jnp.bfloat16)
    yo = to_dtype(xo)
    jax.block_until_ready(yo)
    assert yo.dtype == jnp.float32
    assert yo.shape == xo.shape
    assert jnp.array_equal(yo, xo.astype(jnp.float32))

    print("KERNEL_OK")
</pallas_src>

<mosaic_0001>
module attributes {stable_mosaic.version = 11 : i64} {
  func.func @_cast_kernel(%arg0: memref<1x2048xbf16, #tpu.memory_space<vmem>>, %arg1: memref<1x2048xf32, #tpu.memory_space<vmem>>) attributes {dimension_semantics = [], scalar_prefetch = 0 : i64, scratch_operands = 0 : i64, tpu.core_type = #tpu.core_type<tc>} {
    %c0 = arith.constant 0 : index
    %c0_0 = arith.constant 0 : index
    %0 = vector.load %arg0[%c0, %c0_0] : memref<1x2048xbf16, #tpu.memory_space<vmem>>, vector<1x2048xbf16>
    %1 = arith.extf %0 : vector<1x2048xbf16> to vector<1x2048xf32>
    %c0_1 = arith.constant 0 : index
    %c0_2 = arith.constant 0 : index
    %2 = vector.load %arg1[%c0_1, %c0_2] : memref<1x2048xf32, #tpu.memory_space<vmem>>, vector<1x2048xf32>
    tpu.vector_store %arg1[%c0_1, %c0_2], %1 {strides = array<i32>} : memref<1x2048xf32, #tpu.memory_space<vmem>>, vector<1x2048xf32>,
    return
  }
}

</mosaic_0001>

<bundles_post_ra>
// kernel: tpu_custom_call.1
= control target key start
LH: loop header
LB: loop body
LE: loop exit
PB: predicated region body
PF: predicated region fallthrough
CT: control target
= control target key end

     0   :  { %6 = vsyncpa [#allocation3], 0  ;;  %s168_s0 = inlined_call_operand.hbm [shape: bf16[1,2048], index: 0, kind: input, shape index: {}]   ;;  %s169_s1 = inlined_call_operand.hbm [shape: f32[1,2048], index: 1, kind: output, shape index: {}]  }
   0x1   :  { %7 = vsyncpa [#allocation4], 0  ;;  %s131_s6 = smov [#allocation2]   ;;  %s83_s10 = scalar_lea.hbm %s168_s0, 256 }
   0x2   :  { %s14_s7 = sshll.u32 %s131_s6, 4  ;;  %p84_p0 = scmp.ne.s32.totalorder %s168_s0, %s83_s10  ;;  %s15_s7 = int_to_ptr.vmem [resolvable:$true] %s14_s7 }
   0x3   :  { %p87_p1 = scmp.lt.u32.totalorder %s83_s10, %s168_s0 }
   0x5   :  { %p89_p2 = pnand %p87_p1, %p84_p0 }
   0x7   :  { %92 = shalt.err (!%p89_p2)
}
   0x8   :  { %s93_s15 = scalar_lea.vmem %s15_s7, 256  ;;  %p98_p4 = scmp.lt.s32.totalorder %s15_s7, %s15_s7 }
   0x9   :  { %p94_p3 = scmp.ne.s32.totalorder %s15_s7, %s93_s15  ;;  %p99_p5 = scmp.lt.s32.totalorder %s93_s15, %s93_s15 }
   0xb   :  { %p100_p6 = por %p99_p5, %p98_p4 }
   0xd   :  { %p101_p7 = pnand %p100_p6, %p94_p3 }
   0xf   :  { %104 = shalt.err (!%p101_p7)
}
  0x10   :  { %17 = dma.hbm_to_vmem [thread:$0]  %s168_s0, 256, %s15_s7, [#allocation3]  }
  0x11   :  { %127 = dma.done.wait [#allocation3], 256  }
  0x12   :  { %128 = vsyncadd [#allocation3], 4294967040  ;;  %v34_v0 = vlaneseq  ;;  %v132_v1 = vmov 1966171168   ;;  %v21_v6 = vld [vmem:[#allocation2] sm:$0xff]  ;;  %v22_v7 = vld [vmem:[#allocation2 + $0x8] sm:$0xff] }
  0x13   :  { %v32_v2 = vunpack.c.l.s4 %v132_v1  ;;  %v23_v8 = vunpack.c.l.bf16 %v21_v6  ;;  %v24_v9 = vunpack.c.h.bf16 %v21_v6  ;;  %v25_v10 = vunpack.c.l.bf16 %v22_v7  ;;  %s133_s18 = smov [#allocation5]  }
  0x14   :  { %v35_v3 = vshrl.u32 %v34_v0, 7  ;;  %v26_v11 = vunpack.c.h.bf16 %v22_v7  ;;  %s71_s19 = sshll.u32 %s133_s18, 4  ;;  %s72_s19 = int_to_ptr.vmem [resolvable:$true] %s71_s19 }
  0x15   :  { %v33_v4 = vunpack.c.0.s8 %v32_v2  ;;  %s105_s0 = scalar_lea.vmem %s72_s19, 256  ;;  %p110_p9 = scmp.lt.s32.totalorder %s72_s19, %s72_s19 }
  0x16   :  { %p106_p8 = scmp.ne.s32.totalorder %s72_s19, %s105_s0  ;;  %p111_p10 = scmp.lt.s32.totalorder %s105_s0, %s105_s0 }
  0x17   :  { %v36_v5 = vsub.s32 %v33_v4, %v35_v3 }
  0x18   :  { %p112_p11 = por %p111_p10, %p110_p9 }
  0x19   :  { %v37_v12 = vrot.slane %v23_v8, %v36_v5  ;;  %v44_v13 = vrot.slane %v24_v9, %v36_v5  ;;  %v52_v14 = vrot.slane %v25_v10, %v36_v5  ;;  %v59_v15 = vrot.slane %v26_v11, %v36_v5 }
  0x1a   :  { %p113_p12 = pnand %p112_p11, %p106_p8 }
  0x1b   :  { %v45_v16 = vcombine.low %v37_v12, %v44_v13  ;;  %v60_v17 = vcombine.low %v52_v14, %v59_v15 }
  0x1d   :  { %63 = vst [vmem:[#allocation5] sm:$0xff] %v45_v16  ;;  %64 = vst [vmem:[#allocation5 + $0x8] sm:$0xff] %v60_v17 }
  0x1e   :  { %116 = shalt.err (!%p113_p12)
}
  0x1f   :  { %s117_s22 = scalar_lea.hbm %s169_s1, 256 }
  0x20   :  { %p118_p13 = scmp.ne.s32.totalorder %s169_s1, %s117_s22  ;;  %p121_p0 = scmp.lt.u32.totalorder %s117_s22, %s169_s1 }
  0x22   :  { %p123_p1 = pnand %p121_p0, %p118_p13 }
  0x24   :  { %126 = shalt.err (!%p123_p1)
}
  0x25   :  { %74 = dma.vmem_to_hbm [thread:$0]  %s72_s19, 256, %s169_s1, [#allocation4]  }
  0x26   :  { %129 = dma.done.wait [#allocation4], 256  }
  0x27   :  { %130 = vsyncadd [#allocation4], 4294967040 }
  0x28   :  { %78 = vsyncpa [#allocation3], 1 }
  0x29   :  { %79 = vsyncpa [#allocation4], 1 }

</bundles_post_ra>
